<compile_context>
chip_gen: v5e
topology: v5e:2x2
jax: 0.10.0
libtpu: 0.0.40
codegen_flags: <defaults>
</compile_context>

<pallas_src>
import functools

import jax
import jax.numpy as jnp
from jax import lax
from jax.experimental import pallas as pl
from jax.experimental.pallas import tpu as pltpu


_VMEM_LIMIT_BYTES = 32 * 1024 * 1024   # > v5e's 16 MiB scoped default, safe on v7x
_MIN_BATCH_TILES = 4                   # >= 2 * num_TC on v7x; gives DMA/compute overlap


def _sublane_tile(dtype) -> int:
    """Minimum second-minor tile for the dtype (8 f32 / 16 bf16 / 32 int8-fp8)."""
    itemsize = jnp.dtype(dtype).itemsize
    return {4: 8, 2: 16, 1: 32}.get(itemsize, 8)


def _target_block_bytes() -> int:
    """~4 MiB per input block on 64 MiB-VMEM chips (v7x), ~8 MiB on v5e/v6e."""
    try:
        vmem = int(pltpu.get_tpu_info().vmem_capacity_bytes)
    except Exception:
        vmem = 128 * 1024 * 1024
    return (4 << 20) if vmem <= (64 << 20) else (8 << 20)


def _vmem_limit(block_bytes: int) -> int:
    # 32 MiB covers double-buffered <=8 MiB blocks everywhere; widen only for
    # pathological shapes where a single legal block must exceed the target.
    return int(max(_VMEM_LIMIT_BYTES, 4 * block_bytes))


def _choose_tiles(B, S, H, dtype):
    """Pick (TB, TS) so the (TB, TS, H) input block is ~target bytes and legal."""
    itemsize = jnp.dtype(dtype).itemsize
    sub = _sublane_tile(dtype)
    target = _target_block_bytes()
    row_bytes = S * H * itemsize

    tb = target // max(row_bytes, 1)
    if tb >= B:
        # Whole batch fits the target.  Full-dim TB is always a legal block,
        # but when B is large enough, split into >= _MIN_BATCH_TILES
        # sublane-aligned tiles (megacore load balance + pipeline overlap).
        tb = B
        if B >= _MIN_BATCH_TILES * sub:
            tb = max(sub, ((B // _MIN_BATCH_TILES) // sub) * sub)
        return int(tb), int(S)

    if tb >= sub:
        # Fast path: sublane-aligned batch tiles, whole sequence per block.
        tb = (tb // sub) * sub
        if B >= _MIN_BATCH_TILES * sub:
            cap = max(sub, ((B // _MIN_BATCH_TILES) // sub) * sub)
            tb = min(tb, cap)
        return int(tb), int(S)

    # Long-sequence / wide-row path: TB below the sublane tile would produce an
    # illegal (or masked) output block, so tile the sequence axis instead.
    tb = B if B < sub else sub
    ts = target // max(tb * H * itemsize, 1)
    ts = min(ts, S)
    if ts >= sub:
        ts = (ts // sub) * sub
        if S % ts != 0:
            # Prefer a TS that divides S exactly (mask vanishes), but only if
            # it does not shrink the block by more than 2x.
            for cand in range(ts, max(ts // 2, sub) - 1, -sub):
                if S % cand == 0:
                    ts = cand
                    break
    else:
        ts = min(S, sub)   # either full-dim S or one sublane tile
    return int(tb), int(ts)


def _pooler_kernel_full(x_ref, o_ref):
    # x_ref block: (TB, S, H)   o_ref block: (TB, H)
    # f32 upcast fused into the reduce: only the (TB, H) f32 result stays live.
    # NOTE: on v7x with bf16 inputs an MXU ones-vector contraction
    # (einsum('bsh,s->bh')) could offload this reduce from the VPU; keep the
    # VPU sum until a bundle dump confirms the einsum lowers to vmatmul.
    sum_hidden = jnp.sum(x_ref[...], axis=1, dtype=jnp.float32)        # (TB, H)
    sum_mask = jnp.maximum(jnp.sum(sum_hidden, axis=1, keepdims=True), 1e-9)
    inv = pl.reciprocal(sum_mask, approx=False)                        # exact 1/x
    o_ref[...] = (sum_hidden * inv).astype(o_ref.dtype)


def _pooler_kernel_seqtiled(x_ref, o_ref, acc_ref, *, num_seq_tiles, last_valid):
    # x_ref block: (TB, TS, H)   o_ref block: (TB, H)   acc_ref: (TB, H) f32
    k = pl.program_id(1)
    last = num_seq_tiles - 1

    @pl.when(k == 0)
    def _():
        acc_ref[...] = jnp.zeros_like(acc_ref)

    if last_valid is None:
        # TS divides S: every tile is full, no masking anywhere.
        acc_ref[...] += jnp.sum(x_ref[...], axis=1, dtype=jnp.float32)
    else:
        # Only the final (partial) seq tile pays for the mask.
        @pl.when(k != last)
        def _():
            acc_ref[...] += jnp.sum(x_ref[...], axis=1, dtype=jnp.float32)

        @pl.when(k == last)
        def _():
            x = x_ref[...]
            seq_idx = lax.broadcasted_iota(jnp.int32, x.shape, 1)
            x = jnp.where(seq_idx < last_valid, x, jnp.zeros_like(x))
            acc_ref[...] += jnp.sum(x, axis=1, dtype=jnp.float32)

    @pl.when(k == last)
    def _():
        sum_hidden = acc_ref[...]
        sum_mask = jnp.maximum(jnp.sum(sum_hidden, axis=1, keepdims=True), 1e-9)
        inv = pl.reciprocal(sum_mask, approx=False)
        o_ref[...] = (sum_hidden * inv).astype(o_ref.dtype)


def sum_bert_pooler(hidden_states: jax.Array, *, block_b=None, block_s=None) -> jax.Array:
    B, S, H = hidden_states.shape
    dtype = hidden_states.dtype
    itemsize = jnp.dtype(dtype).itemsize

    TB, TS = _choose_tiles(B, S, H, dtype)
    if block_b is not None:
        TB = min(int(block_b), B)
    if block_s is not None:
        TS = min(int(block_s), S)

    out_shape = jax.ShapeDtypeStruct((B, H), dtype)

    if TS == S:
        # Fast path: whole sequence per block, grid only over batch tiles.
        block_bytes = TB * S * H * itemsize
        return pl.pallas_call(
            _pooler_kernel_full,
            out_shape=out_shape,
            grid_spec=pltpu.PrefetchScalarGridSpec(
                num_scalar_prefetch=0,
                grid=(pl.cdiv(B, TB),),
                in_specs=[pl.BlockSpec((TB, S, H), lambda b: (b, 0, 0))],
                out_specs=pl.BlockSpec((TB, H), lambda b: (b, 0)),
            ),
            compiler_params=pltpu.CompilerParams(
                dimension_semantics=("parallel",),
                vmem_limit_bytes=_vmem_limit(block_bytes),
            ),
        )(hidden_states)

    # Long-sequence path: tile the sequence axis and accumulate in VMEM.
    num_seq_tiles = (S + TS - 1) // TS
    last_valid = None if S % TS == 0 else S - (num_seq_tiles - 1) * TS
    kernel = functools.partial(
        _pooler_kernel_seqtiled,
        num_seq_tiles=num_seq_tiles,
        last_valid=last_valid,
    )
    block_bytes = TB * TS * H * itemsize
    return pl.pallas_call(
        kernel,
        out_shape=out_shape,
        grid_spec=pltpu.PrefetchScalarGridSpec(
            num_scalar_prefetch=0,
            grid=(pl.cdiv(B, TB), num_seq_tiles),
            in_specs=[pl.BlockSpec((TB, TS, H), lambda b, k: (b, k, 0))],
            out_specs=pl.BlockSpec((TB, H), lambda b, k: (b, 0)),
            scratch_shapes=[pltpu.VMEM((TB, H), jnp.float32)],
        ),
        compiler_params=pltpu.CompilerParams(
            dimension_semantics=("parallel", "arbitrary"),
            vmem_limit_bytes=_vmem_limit(block_bytes),
        ),
    )(hidden_states)


def sum_bert_pooler_ref(hidden_states: jax.Array) -> jax.Array:
    sum_hidden = jnp.sum(hidden_states, axis=1)
    sum_mask = jnp.sum(sum_hidden, axis=1, keepdims=True)
    sum_mask = jnp.maximum(sum_mask, 1e-9)
    return sum_hidden / sum_mask


if __name__ == "__main__":
    # SumBertPooler has no parameters; build deterministic inputs.
    key = jax.random.PRNGKey(0)
    k1, k2, k3, k4 = jax.random.split(key, 4)

    # 1) Fast path (whole sequence per block, TB == B full dim).
    B, S, H = 2, 8, 32
    x1 = jax.random.normal(k1, (B, S, H), dtype=jnp.float32) + 0.5
    out1 = jax.block_until_ready(sum_bert_pooler(x1))
    ref1 = sum_bert_pooler_ref(x1)
    assert out1.shape == (B, H)
    assert jnp.allclose(out1, ref1, atol=1e-5, rtol=1e-5), "fast-path mismatch"

    # 2) Seq-tiled accumulator path with a partial final seq tile
    #    (exercises the pl.when-gated OOB mask on the last tile only).
    B2, S2, H2 = 2, 24, 32
    x2 = jax.random.normal(k2, (B2, S2, H2), dtype=jnp.float32) + 0.5
    out2 = jax.block_until_ready(sum_bert_pooler(x2, block_s=16))
    ref2 = sum_bert_pooler_ref(x2)
    assert out2.shape == (B2, H2)
    assert jnp.allclose(out2, ref2, atol=1e-5, rtol=1e-5), "seq-tiled mismatch"

    # 3) Fast path with multiple sublane-aligned batch tiles (grid of 2).
    B3, S3, H3 = 16, 8, 128
    x3 = jax.random.normal(k3, (B3, S3, H3), dtype=jnp.float32) + 0.5
    out3 = jax.block_until_ready(sum_bert_pooler(x3, block_b=8))
    ref3 = sum_bert_pooler_ref(x3)
    assert out3.shape == (B3, H3)
    assert jnp.allclose(out3, ref3, atol=1e-5, rtol=1e-5), "batch-tiled mismatch"

    # 4) bf16 input, seq-tiled with a dtype-aligned TS (16) that divides S
    #    (exercises dtype-aware tiling; no mask branch emitted).
    B4, S4, H4 = 2, 32, 128
    x4 = (jax.random.normal(k4, (B4, S4, H4), dtype=jnp.float32) + 0.5).astype(jnp.bfloat16)
    out4 = jax.block_until_ready(sum_bert_pooler(x4, block_s=16))
    ref4 = sum_bert_pooler_ref(x4.astype(jnp.float32))
    assert out4.shape == (B4, H4)
    assert out4.dtype == jnp.bfloat16
    assert jnp.allclose(out4.astype(jnp.float32), ref4, atol=1e-3, rtol=2e-2), "bf16 mismatch"

    print("KERNEL_OK")
</pallas_src>

<mosaic_0001>
module attributes {stable_mosaic.version = 11 : i64} {
  func.func @_pooler_kernel_full(%arg0: i32, %arg1: memref<2x8x32xf32, #tpu.memory_space<vmem>>, %arg2: memref<2x32xf32, #tpu.memory_space<vmem>>) attributes {dimension_semantics = [#tpu.dimension_semantics<parallel>], iteration_bounds = array<i64: 1>, scalar_prefetch = 0 : i64, scratch_operands = 0 : i64, tpu.core_type = #tpu.core_type<tc>, window_params = [{transform_indices = @transform_0, window_bounds = array<i64: 2, 8, 32>}, {transform_indices = @transform_1, window_bounds = array<i64: 2, 32>}]} {
    %c0 = arith.constant 0 : index
    %c0_0 = arith.constant 0 : index
    %c0_1 = arith.constant 0 : index
    %0 = vector.load %arg1[%c0, %c0_0, %c0_1] : memref<2x8x32xf32, #tpu.memory_space<vmem>>, vector<2x8x32xf32>
    %cst = arith.constant dense<0.000000e+00> : vector<2x32xf32>
    %1 = vector.multi_reduction <add>, %0, %cst [1] : vector<2x8x32xf32> to vector<2x32xf32>
    %cst_2 = arith.constant dense<0.000000e+00> : vector<2xf32>
    %2 = vector.multi_reduction <add>, %1, %cst_2 [1] : vector<2x32xf32> to vector<2xf32>
    %3 = vector.shape_cast %2 : vector<2xf32> to vector<2x1xf32>
    %cst_3 = arith.constant 9.99999971E-10 : f32
    %4 = vector.broadcast %cst_3 : f32 to vector<2x1xf32>
    %5 = arith.maximumf %3, %4 : vector<2x1xf32>
    %6 = tpu.reciprocal %5 : vector<2x1xf32> -> vector<2x1xf32>
    %7 = vector.broadcast %6 : vector<2x1xf32> to vector<2x32xf32>
    %8 = arith.mulf %1, %7 : vector<2x32xf32>
    %c0_4 = arith.constant 0 : index
    %c0_5 = arith.constant 0 : index
    %9 = vector.load %arg2[%c0_4, %c0_5] : memref<2x32xf32, #tpu.memory_space<vmem>>, vector<2x32xf32>
    tpu.vector_store %arg2[%c0_4, %c0_5], %8 {strides = array<i32>} : memref<2x32xf32, #tpu.memory_space<vmem>>, vector<2x32xf32>,
    return
  }
  func.func @transform_0(%arg0: i32) -> (i32, i32, i32) {
    %c0_i32 = arith.constant 0 : i32
    %c0_i32_0 = arith.constant 0 : i32
    %c0_i32_1 = arith.constant 0 : i32
    return %arg0, %c0_i32, %c0_i32_0 : i32, i32, i32
  }
  func.func @transform_1(%arg0: i32) -> (i32, i32) {
    %c0_i32 = arith.constant 0 : i32
    %c0_i32_0 = arith.constant 0 : i32
    return %arg0, %c0_i32 : i32, i32
  }
}

</mosaic_0001>

<bundles_post_ra>
// kernel: tpu_custom_call.1
= control target key start
LH: loop header
LB: loop body
LE: loop exit
PB: predicated region body
PF: predicated region fallthrough
CT: control target
= control target key end

     0   :  { %6 = vsyncpa [#allocation3], 0  ;;  %s177_s0 = inlined_call_operand.hbm [shape: f32[2,8,32], index: 0, kind: input, shape index: {}]   ;;  %s178_s1 = inlined_call_operand.hbm [shape: f32[2,32], index: 1, kind: output, shape index: {}]  }
   0x1   :  { %7 = vsyncpa [#allocation4], 0  ;;  %s12_s8 = sshll.u32 %s177_s0, 4  ;;  %s153_s9 = smov [#allocation2]   ;;  %s13_s8 = int_to_ptr.hbm [resolvable:$true] %s12_s8 }
   0x2   :  { %s14_s10 = sshll.u32 %s153_s9, 4  ;;  %s154_s11 = smov 128   ;;  %s15_s10 = int_to_ptr.vmem [resolvable:$true] %s14_s10 }
   0x3   :  { %s155_s12 = smov 8  }
   0x4   :  { %20 = dma.hbm_to_vmem [thread:$0]  %s13_s8, 256, %s15_s10, [#allocation3], %s154_s11, %s154_s11, %s155_s12  }
   0x5   :  { %149 = dma.done.wait [#allocation3], 256  }
   0x6   :  { %150 = vsyncadd [#allocation3], 4294967040  ;;  %vm27_vm0 = vcmask 261120   ;;  %v25_v0 = vld [vmem:[#allocation2] sm:$0xff]  ;;  %v26_v1 = vld [vmem:[#allocation2 + $0x8] sm:$0xff]  ;;  %vm44_vm1 = vcmask 1041409  }
   0x7   :  { %v28_v2 = vsel %vm27_vm0, %v25_v0, 0.0  ;;  %v35_v3 = vsel %vm27_vm0, %v26_v1, 0.0  ;;  %vm47_vm2 = vcmask 254976   ;;  %s156_s0 = smov [#allocation5]   ;;  %s85_s16 = sshll.u32 %s178_s1, 4  ;;  %s86_s16 = int_to_ptr.hbm [resolvable:$true] %s85_s16 }
   0x8   :  { %v29_v4 = vrot.slane %v28_v2, 4  ;;  %v36_v5 = vrot.slane %v35_v3, 4  ;;  %s83_s13 = sshll.u32 %s156_s0, 4  ;;  %s84_s13 = int_to_ptr.vmem [resolvable:$true] %s83_s13 }
   0xa   :  { %v30_v6 = vadd.f32 %v29_v4, %v28_v2  ;;  %v37_v7 = vadd.f32 %v36_v5, %v35_v3 }
   0xc   :  { %v31_v8 = vrot.slane %v30_v6, 2  ;;  %v38_v9 = vrot.slane %v37_v7, 2 }
   0xe   :  { %v32_v10 = vadd.f32 %v31_v8, %v30_v6  ;;  %v39_v11 = vadd.f32 %v38_v9, %v37_v7 }
  0x10   :  { %v33_v12 = vrot.slane %v32_v10, 1  ;;  %v40_v13 = vrot.slane %v39_v11, 1 }
  0x12   :  { %v34_v14 = vadd.f32 %v33_v12, %v32_v10  ;;  %v41_v15 = vadd.f32 %v40_v13, %v39_v11 }
  0x14   :  { %v45_v16 = vsel %vm44_vm1, %v41_v15, %v34_v14 }
  0x15   :  { %v48_v17 = vsel %vm47_vm2, %v45_v16, 0.0 }
  0x16   :  { %49 = vadd.xlane.f32.xlu0 %v48_v17 }
  0x89   :  { %v50_v18 = vpop.xlane.xlu0 %49 }
  0x8a   :  { %v51_v19 = vmax.f32 %v50_v18, 1e-09 }
  0x8c   :  { %99 = vrcp.f32 %v51_v19  ;;  %v63_v23 = vand.u32 2147483648, %v51_v19  ;;  %v61_v25 = vand.u32 2147483647, %v51_v19  ;;  %vm57_vm4 = vweird.f32 %v51_v19 }
  0x8e   :  { %v64_v27 = vor.u32 1.1754944e-38, %v63_v23  ;;  %vm62_vm6 = vcmp.eq.f32.partialorder %v61_v25, 8.507059e+37 }
  0x92   :  { %v100_v20 = vpop.eup %99 }
  0x93   :  { %v53_v21 = vmul.f32 %v100_v20, %v51_v19  ;;  %vm58_vm3 = vweird.f32 %v100_v20 }
  0x94   :  { %vm59_vm5 = vmor %vm57_vm4, %vm58_vm3 }
  0x95   :  { %v54_v22 = vsub.f32 1.0, %v53_v21 }
  0x97   :  { %v55_v24 = vmul.f32 %v100_v20, %v54_v22 }
  0x99   :  { %v56_v26 = vadd.f32 %v100_v20, %v55_v24 }
  0x9b   :  { %v60_v28 = vsel %vm59_vm5, %v100_v20, %v56_v26 }
  0x9c   :  { %v65_v29 = vsel %vm62_vm6, %v64_v27, %v60_v28 }
  0x9d   :  { %v67_v30 = vrot.slane %v65_v29, 1  ;;  %v70_v32 = vmul.f32 %v65_v29, %v34_v14 }
  0x9f   :  { %v71_v31 = vmul.f32 %v67_v30, %v41_v15 }
  0xa1   :  { %v74_v33 = vrot.slane %v71_v31, 7 }
  0xa3   :  { %v75_v34 = vsel %vm44_vm1, %v74_v33, %v70_v32 }
  0xa4   :  { %77 = vst.msk [vmem:[#allocation5] sm:$0x3] %vm47_vm2, %v75_v34 }
  0xa5   :  { %88 = dma.vmem_to_hbm [thread:$0]  %s84_s13, 32, %s86_s16, [#allocation4]  }
  0xa6   :  { %151 = dma.done.wait [#allocation4], 32  }
  0xa7   :  { %152 = vsyncadd [#allocation4], 4294967264 }
  0xa8   :  { %93 = vsyncpa [#allocation3], 1 }
  0xa9   :  { %94 = vsyncpa [#allocation4], 1 }

</bundles_post_ra>
